<compile_context>
chip_gen: v5e
topology: v5e:2x2
jax: 0.10.0
libtpu: 0.0.40
codegen_flags: <defaults>
</compile_context>

<pallas_src>
import functools

import jax
import jax.numpy as jnp
from jax import lax
from jax.experimental import pallas as pl
from jax.experimental.pallas import tpu as pltpu

_LANES = 128


def focal_loss_kernel(n_ref, logits_ref, targets_ref, alpha_t_ref, partial_ref,
                      *, gamma):
    """One batch tile: per-row focal loss, summed into a (1, 128) partial."""
    i = pl.program_id(0)
    n_valid = n_ref[0]                                  # SMEM scalar

    logits = logits_ref[...].astype(jnp.float32)        # (TN, C) f32 math
    targets = targets_ref[...]                          # (TN, 1) int32
    alpha_t = alpha_t_ref[...].astype(jnp.float32)      # (TN, 1)

    tn, c = logits.shape

    # Boolean class mask (no materialized float one-hot).
    class_ids = lax.broadcasted_iota(jnp.int32, (tn, c), dimension=1)
    cls_mask = class_ids == targets                      # (TN, C) bool

    # cross entropy with logits (reduction='none'):
    #   ce = logsumexp(logits) - logits[target]
    m = jnp.max(logits, axis=-1, keepdims=True)                               # (TN,1)
    sumexp = jnp.sum(jnp.exp(logits - m), axis=-1, keepdims=True)             # (TN,1)
    lse = m + jnp.log(sumexp)                                                 # (TN,1)
    target_logit = jnp.sum(jnp.where(cls_mask, logits, 0.0),
                           axis=-1, keepdims=True)                            # (TN,1)
    ce = lse - target_logit                                                   # (TN,1)

    # Focal modulation: (1 - pt)**gamma * ce, pt = exp(-ce).
    # exp(-ce) is a per-row EUP op (cheap); keeping ce = lse - target_logit is
    # more robust than reconstructing pt from the exp terms when pt underflows.
    pt = jnp.exp(-ce)
    one_minus_pt = jnp.maximum(1.0 - pt, 0.0)            # clamp fp rounding (pt>1)
    if isinstance(gamma, int):
        mod = lax.integer_pow(one_minus_pt, gamma)        # pure VPU multiplies
    else:
        mod = one_minus_pt ** gamma                       # exp/log path (EUP)
    focal = alpha_t * (mod * ce)                          # (TN, 1)

    # Mask padded / ragged rows (global row index >= true N).
    row_ids = lax.broadcasted_iota(jnp.int32, (tn, 1), dimension=0) + i * tn
    focal = jnp.where(row_ids < n_valid, focal, 0.0)

    # Per-tile partial sum, broadcast across the 128 lanes.
    partial_ref[...] = jnp.broadcast_to(jnp.sum(focal), partial_ref.shape)


def _round_up(x, m):
    return ((x + m - 1) // m) * m


def _vmem_budget():
    """(per-buffer logits budget, vmem_limit_bytes) chosen per TPU generation."""
    try:
        vmem = pltpu.get_tpu_info().vmem_capacity_bytes
    except Exception:
        vmem = 64 * 1024 * 1024                           # be conservative (v7x-safe)
    if vmem >= 128 * 1024 * 1024:                         # v5e / v6e
        return 16 * 1024 * 1024, 64 * 1024 * 1024
    return 12 * 1024 * 1024, 48 * 1024 * 1024             # v7x (64 MiB physical)


def _pick_tile_rows(n, c, elem_bytes, budget_bytes):
    """Byte-targeted tile: as many rows as fit `budget_bytes`, multiple of 8."""
    rows_budget = max(8, budget_bytes // max(c * elem_bytes, 1))
    tn = min(rows_budget, _round_up(max(n, 1), 8))
    return max(8, (tn // 8) * 8)


def focal_loss(logits, targets, alpha=None, gamma=2, reduction="mean"):
    """logits: (N, C) float32/bfloat16; targets: (N,) int; alpha: (C,) or None."""
    assert reduction in ("mean", "sum"), "kernel implements 'mean' / 'sum'"

    n, c = logits.shape
    elem_bytes = jnp.dtype(logits.dtype).itemsize
    budget_bytes, vmem_limit = _vmem_budget()
    tn = _pick_tile_rows(n, c, elem_bytes, budget_bytes)
    num_tiles = pl.cdiv(n, tn)

    # Normalize float-integral gamma (e.g. 2.0) so we hit the integer_pow path.
    if isinstance(gamma, float) and float(gamma).is_integer():
        gamma = int(gamma)

    targets_i = targets.astype(jnp.int32).reshape(n, 1)

    # alpha[targets] gather is tiny (N,) work: do it in the wrapper, not per
    # (TN, C) element in the kernel.
    if alpha is None:
        alpha_t = jnp.ones((n, 1), dtype=jnp.float32)
    else:
        alpha_arr = jnp.asarray(alpha, dtype=jnp.float32)
        alpha_t = alpha_arr[targets.astype(jnp.int32)].reshape(n, 1)

    n_valid = jnp.array([n], dtype=jnp.int32)             # SMEM scalar prefetch

    cost = pl.CostEstimate(
        flops=8 * n * c,
        transcendentals=n * c,
        bytes_accessed=n * c * elem_bytes + 8 * n + num_tiles * _LANES * 4,
    )

    partials = pl.pallas_call(
        functools.partial(focal_loss_kernel, gamma=gamma),
        out_shape=jax.ShapeDtypeStruct((num_tiles, _LANES), jnp.float32),
        grid_spec=pltpu.PrefetchScalarGridSpec(
            num_scalar_prefetch=1,
            grid=(num_tiles,),
            in_specs=[
                pl.BlockSpec((tn, c), lambda i, n_ref: (i, 0)),   # logits tile (ragged tail ok)
                pl.BlockSpec((tn, 1), lambda i, n_ref: (i, 0)),   # targets tile
                pl.BlockSpec((tn, 1), lambda i, n_ref: (i, 0)),   # alpha[targets] tile
            ],
            out_specs=pl.BlockSpec((1, _LANES), lambda i, n_ref: (i, 0)),
        ),
        compiler_params=pltpu.CompilerParams(
            dimension_semantics=("parallel",),          # megacore-shardable
            vmem_limit_bytes=vmem_limit,
        ),
        cost_estimate=cost,
    )(n_valid, logits, targets_i, alpha_t)

    total = jnp.sum(partials[:, 0])
    if reduction == "mean":
        return total / jnp.float32(n)
    return total


def focal_loss_ref(logits, targets, alpha, gamma=2):
    # pure-JAX reference for sanity checking
    logits = logits.astype(jnp.float32)
    lse = jax.nn.logsumexp(logits, axis=-1)
    tgt_logit = jnp.take_along_axis(logits, targets[:, None], axis=-1)[:, 0]
    ce = lse - tgt_logit
    pt = jnp.exp(-ce)
    focal = (1.0 - pt) ** gamma * ce
    if alpha is not None:
        focal = alpha[targets] * focal
    return focal.mean()


if __name__ == "__main__":
    key = jax.random.PRNGKey(0)
    k1, k2, k3 = jax.random.split(key, 3)

    # Small shapes consistent with the training script: batch=8, 4 classes.
    N, C = 8, 4
    logits = jax.random.normal(k1, (N, C), dtype=jnp.float32)
    targets = jax.random.randint(k2, (N,), 0, C, dtype=jnp.int32)

    # alpha: per-class weights, normalized as in the training script.
    alpha = jax.random.uniform(k3, (C,), dtype=jnp.float32) + 0.1
    alpha = alpha / alpha.sum()

    # f32 path.
    loss = focal_loss(logits, targets, alpha, gamma=2, reduction="mean")
    loss = jax.block_until_ready(loss)
    ref = focal_loss_ref(logits, targets, alpha, gamma=2)
    assert jnp.allclose(loss, ref, rtol=1e-5, atol=1e-6), (loss, ref)

    # Ragged-batch path (N not a multiple of the row tile) — exercises the
    # no-pad data path with the in-kernel row mask.
    N2 = 13
    logits2 = jax.random.normal(jax.random.PRNGKey(7), (N2, C), dtype=jnp.float32)
    targets2 = jax.random.randint(jax.random.PRNGKey(8), (N2,), 0, C, dtype=jnp.int32)
    loss2 = jax.block_until_ready(
        focal_loss(logits2, targets2, alpha, gamma=2, reduction="mean"))
    ref2 = focal_loss_ref(logits2, targets2, alpha, gamma=2)
    assert jnp.allclose(loss2, ref2, rtol=1e-5, atol=1e-6), (loss2, ref2)

    # Native bf16 logits path (no wrapper upcast; kernel does f32 math).
    loss_bf16 = jax.block_until_ready(
        focal_loss(logits.astype(jnp.bfloat16), targets, alpha, gamma=2))
    ref_bf16 = focal_loss_ref(logits.astype(jnp.bfloat16), targets, alpha, gamma=2)
    assert jnp.allclose(loss_bf16, ref_bf16, rtol=1e-1, atol=1e-3), (loss_bf16, ref_bf16)

    print("KERNEL_OK")
</pallas_src>

<mosaic_0001>
module attributes {stable_mosaic.version = 11 : i64} {
  func.func @focal_loss_kernel(%arg0: i32, %arg1: memref<1xi32, #tpu.memory_space<smem>>, %arg2: memref<8x4xf32, #tpu.memory_space<vmem>>, %arg3: memref<8x1xi32, #tpu.memory_space<vmem>>, %arg4: memref<8x1xf32, #tpu.memory_space<vmem>>, %arg5: memref<1x128xf32, #tpu.memory_space<vmem>>) attributes {dimension_semantics = [#tpu.dimension_semantics<parallel>], iteration_bounds = array<i64: 1>, scalar_prefetch = 1 : i64, scratch_operands = 0 : i64, tpu.core_type = #tpu.core_type<tc>, window_params = [{transform_indices = @transform_0, window_bounds = array<i64: 8, 4>}, {transform_indices = @transform_1, window_bounds = array<i64: 8, 1>}, {transform_indices = @transform_2, window_bounds = array<i64: 8, 1>}, {transform_indices = @transform_3, window_bounds = array<i64: 1, 128>}]} {
    %c0 = arith.constant 0 : index
    %0 = memref.load %arg1[%c0] : memref<1xi32, #tpu.memory_space<smem>>
    %c0_0 = arith.constant 0 : index
    %c0_1 = arith.constant 0 : index
    %1 = vector.load %arg2[%c0_0, %c0_1] : memref<8x4xf32, #tpu.memory_space<vmem>>, vector<8x4xf32>
    %c0_2 = arith.constant 0 : index
    %c0_3 = arith.constant 0 : index
    %2 = vector.load %arg3[%c0_2, %c0_3] : memref<8x1xi32, #tpu.memory_space<vmem>>, vector<8x1xi32>
    %c0_4 = arith.constant 0 : index
    %c0_5 = arith.constant 0 : index
    %3 = vector.load %arg4[%c0_4, %c0_5] : memref<8x1xf32, #tpu.memory_space<vmem>>, vector<8x1xf32>
    %4 = tpu.iota {dimensions = array<i32: 1>} : vector<8x4xi32>
    %5 = vector.broadcast %2 : vector<8x1xi32> to vector<8x4xi32>
    %6 = arith.cmpi eq, %4, %5 : vector<8x4xi32>
    %cst = arith.constant dense<0xFF800000> : vector<8xf32>
    %7 = vector.multi_reduction <maximumf>, %1, %cst [1] : vector<8x4xf32> to vector<8xf32>
    %8 = vector.shape_cast %7 : vector<8xf32> to vector<8x1xf32>
    %9 = vector.broadcast %8 : vector<8x1xf32> to vector<8x4xf32>
    %10 = arith.subf %1, %9 : vector<8x4xf32>
    %11 = math.exp %10 : vector<8x4xf32>
    %cst_6 = arith.constant dense<0.000000e+00> : vector<8xf32>
    %12 = vector.multi_reduction <add>, %11, %cst_6 [1] : vector<8x4xf32> to vector<8xf32>
    %13 = vector.shape_cast %12 : vector<8xf32> to vector<8x1xf32>
    %14 = math.log %13 : vector<8x1xf32>
    %15 = arith.addf %8, %14 : vector<8x1xf32>
    %cst_7 = arith.constant 0.000000e+00 : f32
    %16 = vector.broadcast %cst_7 : f32 to vector<8x4xf32>
    %17 = arith.select %6, %1, %16 : vector<8x4xi1>, vector<8x4xf32>
    %cst_8 = arith.constant dense<0.000000e+00> : vector<8xf32>
    %18 = vector.multi_reduction <add>, %17, %cst_8 [1] : vector<8x4xf32> to vector<8xf32>
    %19 = vector.shape_cast %18 : vector<8xf32> to vector<8x1xf32>
    %20 = arith.subf %15, %19 : vector<8x1xf32>
    %cst_9 = arith.constant 0.000000e+00 : f32
    %21 = vector.broadcast %cst_9 : f32 to vector<8x1xf32>
    %22 = arith.subf %21, %20 : vector<8x1xf32>
    %23 = math.exp %22 : vector<8x1xf32>
    %cst_10 = arith.constant 1.000000e+00 : f32
    %24 = vector.broadcast %cst_10 : f32 to vector<8x1xf32>
    %25 = arith.subf %24, %23 : vector<8x1xf32>
    %cst_11 = arith.constant 0.000000e+00 : f32
    %26 = vector.broadcast %cst_11 : f32 to vector<8x1xf32>
    %27 = arith.maximumf %25, %26 : vector<8x1xf32>
    %28 = arith.mulf %27, %27 : vector<8x1xf32>
    %29 = arith.mulf %28, %20 : vector<8x1xf32>
    %30 = arith.mulf %3, %29 : vector<8x1xf32>
    %31 = tpu.iota {dimensions = array<i32: 0>} : vector<8x1xi32>
    %c8_i32 = arith.constant 8 : i32
    %32 = arith.muli %arg0, %c8_i32 : i32
    %33 = vector.broadcast %32 : i32 to vector<8x1xi32>
    %34 = arith.addi %31, %33 : vector<8x1xi32>
    %35 = vector.broadcast %0 : i32 to vector<8x1xi32>
    %36 = arith.cmpi slt, %34, %35 : vector<8x1xi32>
    %cst_12 = arith.constant 0.000000e+00 : f32
    %37 = vector.broadcast %cst_12 : f32 to vector<8x1xf32>
    %38 = arith.select %36, %30, %37 : vector<8x1xi1>, vector<8x1xf32>
    %39 = vector.shape_cast %38 : vector<8x1xf32> to vector<1x8x1xf32>
    %cst_13 = arith.constant dense<0.000000e+00> : vector<1xf32>
    %40 = vector.multi_reduction <add>, %39, %cst_13 [1, 2] : vector<1x8x1xf32> to vector<1xf32>
    %41 = vector.shape_cast %40 : vector<1xf32> to vector<1x1x1xf32>
    %42 = vector.extract %41[0, 0, 0] : f32 from vector<1x1x1xf32>
    %43 = vector.broadcast %42 : f32 to vector<1x128xf32>
    %c0_14 = arith.constant 0 : index
    %c0_15 = arith.constant 0 : index
    %44 = vector.load %arg5[%c0_14, %c0_15] : memref<1x128xf32, #tpu.memory_space<vmem>>, vector<1x128xf32>
    tpu.vector_store %arg5[%c0_14, %c0_15], %43 {strides = array<i32>} : memref<1x128xf32, #tpu.memory_space<vmem>>, vector<1x128xf32>,
    return
  }
  func.func @transform_0(%arg0: i32, %arg1: memref<1xi32, #tpu.memory_space<smem>>) -> (i32, i32) {
    %c0_i32 = arith.constant 0 : i32
    %c0_i32_0 = arith.constant 0 : i32
    return %arg0, %c0_i32 : i32, i32
  }
  func.func @transform_1(%arg0: i32, %arg1: memref<1xi32, #tpu.memory_space<smem>>) -> (i32, i32) {
    %c0_i32 = arith.constant 0 : i32
    %c0_i32_0 = arith.constant 0 : i32
    return %arg0, %c0_i32 : i32, i32
  }
  func.func @transform_2(%arg0: i32, %arg1: memref<1xi32, #tpu.memory_space<smem>>) -> (i32, i32) {
    %c0_i32 = arith.constant 0 : i32
    %c0_i32_0 = arith.constant 0 : i32
    return %arg0, %c0_i32 : i32, i32
  }
  func.func @transform_3(%arg0: i32, %arg1: memref<1xi32, #tpu.memory_space<smem>>) -> (i32, i32) {
    %c0_i32 = arith.constant 0 : i32
    %c0_i32_0 = arith.constant 0 : i32
    return %arg0, %c0_i32 : i32, i32
  }
}

</mosaic_0001>

<bundles_post_ra>
// kernel: tpu_custom_call.1
= control target key start
LH: loop header
LB: loop body
LE: loop exit
PB: predicated region body
PF: predicated region fallthrough
CT: control target
= control target key end

     0   :  { %vm27_vm0 = vcmask 31744   ;;  %s172_s0 = inlined_call_operand.<no memory space> [shape: s32[1], index: 0, kind: input, shape index: {}]   ;;  %s173_s1 = inlined_call_operand.vmem [shape: f32[8,4], index: 1, kind: input, shape index: {}]   ;;  %s174_s2 = inlined_call_operand.vmem [shape: s32[8,1], index: 2, kind: input, shape index: {}]   ;;  %s175_s3 = inlined_call_operand.vmem [shape: f32[8,1], index: 3, kind: input, shape index: {}]   ;;  %s176_s4 = inlined_call_operand.hbm [shape: f32[1,128], index: 4, kind: output, shape index: {}]  }
   0x1   :  { %v18_v0 = vld [vmem:[%s173_s1] sm:$0xff] }
   0x2   :  { %10 = vsyncpa [#allocation5], 0  ;;  %v28_v1 = vsel %vm27_vm0, %v18_v0, -inf  ;;  %v127_v2 = vmov 0   ;;  %v19_v3 = vld [vmem:[%s174_s2] sm:$0xff]  ;;  %v21_v9 = vlaneseq  ;;  %v58_v27 = vstv %s172_s0  ;;  %s128_s0 = smov [#allocation4]  }
   0x3   :  { %94 = vset.pattern.permute.xlu0 %v127_v2  ;;  %v20_v28 = vld [vmem:[%s175_s3] sm:$0xff]  ;;  %vm61_vm3 = vcmask 7168   ;;  %s79_s21 = sshll.u32 %s128_s0, 4  ;;  %s81_s3 = sshll.u32 %s176_s4, 4  ;;  %s80_s21 = int_to_ptr.vmem [resolvable:$true] %s79_s21  ;;  %s82_s3 = int_to_ptr.hbm [resolvable:$true] %s81_s3 }
   0x4   :  { %29 = vmax.xlane.f32.xlu0 %v28_v1  ;;  %v22_v10 = vand.u32 127, %v21_v9  ;;  %v54_v25 = vshrl.u32 %v21_v9, 7 }
   0x6   :  { %vm59_vm2 = vcmp.lt.s32.totalorder %v54_v25, %v58_v27 }
  0x18   :  { %24 = vperm.xlu0 %94, %v19_v3  }
  0x77   :  { %v30_v4 = vpop.xlane.xlu0 %29 }
  0x78   :  { %v31_v5 = vsub.f32 %v18_v0, %v30_v4 }
  0x7a   :  { %v32_v6 = vmul.f32 1.442695, %v31_v5 }
  0x7c   :  { %95 = vpow2.f32 %v32_v6 }
  0x82   :  { %v96_v7 = vpop.eup %95 }
  0x83   :  { %v34_v8 = vsel %vm27_vm0, %v96_v7, 0.0 }
  0x84   :  { %35 = vadd.xlane.f32.xlu1 %v34_v8 }
  0x8a   :  { %v25_v11 = vpop.permute.xlu0 %24 }
  0x8b   :  { %vm26_vm1 = vcmp.eq.s32.totalorder %v22_v10, %v25_v11 }
  0x8c   :  { %v40_v12 = vsel %vm26_vm1, %v18_v0, 0.0 }
  0x8d   :  { %v41_v13 = vsel %vm27_vm0, %v40_v12, 0.0 }
  0x8e   :  { %42 = vadd.xlane.f32.xlu1 %v41_v13 }
  0xf7   :  { %v36_v14 = vpop.xlane.xlu1 %35 }
  0xf8   :  { %97 = vlog2.f32 %v36_v14 }
  0xfe   :  { %v98_v15 = vpop.eup %97 }
  0xff   :  { %v38_v16 = vmul.f32 0.6931472, %v98_v15 }
 0x101   :  { %v39_v17 = vadd.f32 %v38_v16, %v30_v4  ;;  %v43_v18 = vpop.xlane.xlu1 %42 }
 0x103   :  { %v44_v19 = vsub.f32 %v39_v17, %v43_v18 }
 0x105   :  { %v45_v20 = vsub.f32 0.0, %v44_v19 }
 0x107   :  { %v46_v21 = vmul.f32 1.442695, %v45_v20 }
 0x109   :  { %99 = vpow2.f32 %v46_v21 }
 0x10f   :  { %v100_v22 = vpop.eup %99 }
 0x110   :  { %v48_v23 = vsub.f32 1.0, %v100_v22 }
 0x112   :  { %v49_v24 = vmax.f32 %v48_v23, 0.0 }
 0x114   :  { %v50_v26 = vmul.f32 %v49_v24, %v49_v24 }
 0x116   :  { %v51_v29 = vmul.f32 %v50_v26, %v44_v19 }
 0x118   :  { %v52_v30 = vmul.f32 %v51_v29, %v20_v28 }
 0x11a   :  { %v60_v31 = vsel %vm59_vm2, %v52_v30, 0.0 }
 0x11b   :  { %v62_v32 = vsel %vm61_vm3, %v60_v31, 0.0 }
 0x11c   :  { %63 = vadd.xlane.f32.xlu2 %v62_v32 }
 0x18f   :  { %v64_v33 = vpop.xlane.xlu2 %63 }
 0x190   :  { %v65_v34 = vrot.slane %v64_v33, 4 }
 0x192   :  { %v66_v35 = vadd.f32 %v65_v34, %v64_v33 }
 0x194   :  { %v67_v36 = vrot.slane %v66_v35, 2 }
 0x196   :  { %v68_v37 = vadd.f32 %v67_v36, %v66_v35 }
 0x198   :  { %v69_v38 = vrot.slane %v68_v37, 1 }
 0x19a   :  { %v70_v39 = vadd.f32 %v69_v38, %v68_v37 }
 0x19c   :  { %90 = vpush %v70_v39 }
 0x1cd   :  { %s91_s24 = spop %90 }
 0x1ce   :  { %v72_v40 = vstv %s91_s24 }
 0x1cf   :  { %73 = vst [vmem:[#allocation4] sm:$0x1] %v72_v40 }
 0x1d0   :  { %84 = dma.vmem_to_hbm [thread:$0]  %s80_s21, 16, %s82_s3, [#allocation5]  }
 0x1d1   :  { %125 = dma.done.wait [#allocation5], 16  }
 0x1d2   :  { %126 = vsyncadd [#allocation5], 4294967280 }
 0x1d3   :  { %89 = vsyncpa [#allocation5], 1 }

</bundles_post_ra>
